<compile_context>
chip_gen: v7x
topology: tpu7x:2x2x1
jax: 0.10.0
libtpu: 0.0.40
codegen_flags: <defaults>
</compile_context>

<pallas_src>
import jax
import jax.numpy as jnp
from jax.experimental import pallas as pl
from jax.experimental.pallas import tpu as pltpu

_LANE = 128


def _round_up(n, m=_LANE):
    return ((n + m - 1) // m) * m


def _make_decoder_kernel(layer_in_widths, out_f):
    """Fused kernel: h = relu(h @ W_i + b_i) for every dec_block.

    refs = (x_ref, wb_ref_0, ..., wb_ref_{L-1}, o_ref). Each wb_ref packs the
    (pre-transposed, lane-padded) weight in rows [0:in_p) and the bias in row
    in_p. The final store writes only the first out_f (unpadded) columns.
    """
    n_layers = len(layer_in_widths)

    def kernel(*refs):
        x_ref = refs[0]
        o_ref = refs[-1]
        h = x_ref[...]                                   # (B, in_f) in VMEM
        for i in range(n_layers):
            in_p = layer_in_widths[i]                    # static per-layer width
            wb = refs[1 + i][...]                        # (in_p + 1, out_p)
            w = wb[:in_p, :]                             # static, sublane-aligned slice
            b = wb[in_p:in_p + 1, :]                     # (1, out_p) bias row
            h = jnp.dot(h, w, preferred_element_type=jnp.float32)
            h = jnp.maximum(h + b, 0.0)                  # bias broadcast + ReLU
        o_ref[...] = h[:, :out_f].astype(o_ref.dtype)    # unpadded (B, out_f) store

    return kernel


def init_decoder_params(key, dec_sizes):
    """PyTorch-style nn.Linear params: list of (w (out_f, in_f), b (out_f,))."""
    params = []
    for in_f, out_f in zip(dec_sizes, dec_sizes[1:]):
        key, kw, kb = jax.random.split(key, 3)
        bound = 1.0 / float(in_f) ** 0.5                 # PyTorch default init range
        w = jax.random.uniform(kw, (out_f, in_f), jnp.float32, -bound, bound)
        b = jax.random.uniform(kb, (out_f,), jnp.float32, -bound, bound)
        params.append((w, b))
    return params


def prepare_params(params):
    """One-time prep: pack each layer's [W.T ; b] into a single padded buffer.

    Layer i buffer shape = (in_p_i + 1, out_p_i) where in_p_i is the previous
    layer's padded output width (raw in_f for layer 0, NOT padded) and
    out_p_i = round_up(out_f, 128). Padded entries are exact zeros; combined
    with relu(0) = 0 this keeps padded lanes at 0 through the whole chain, so
    the unpadded slice of the result is bit-identical to unpadded math.
    Returns (list_of_packed_buffers, list_of_static_in_widths).
    """
    prepared = []
    layer_in_widths = []
    prev_pad = None
    for w, b in params:
        out_f, in_f = w.shape
        in_p = in_f if prev_pad is None else prev_pad    # match previous padded width
        assert in_p >= in_f, "padded input width must cover real input width"
        out_p = _round_up(out_f)
        wb = jnp.zeros((in_p + 1, out_p), jnp.float32)
        wb = wb.at[:in_f, :out_f].set(w.T)               # weight rows (transposed)
        wb = wb.at[in_p, :out_f].set(b)                  # bias as the last row
        prepared.append(wb)
        layer_in_widths.append(in_p)
        prev_pad = out_p
    return prepared, layer_in_widths


def build_decoder_forward(layer_in_widths, out_f):
    """Returns a jitted forward(x, prepared_buffers) for the fused decoder."""
    kernel = _make_decoder_kernel(layer_in_widths, out_f)
    n_layers = len(layer_in_widths)

    @jax.jit
    def forward(x, prepared):
        h = x.reshape(x.shape[0], -1)                    # nn.Flatten (first block)
        vmem = lambda: pl.BlockSpec(memory_space=pltpu.MemorySpace.VMEM)
        y = pl.pallas_call(
            kernel,
            out_shape=jax.ShapeDtypeStruct((h.shape[0], out_f), jnp.float32),
            in_specs=[vmem() for _ in range(1 + n_layers)],
            out_specs=vmem(),
        )(h, *prepared)
        return y                                          # already unpadded

    return forward


def _reference_forward(x, params):
    h = x
    for w, b in params:
        h = h.reshape(h.shape[0], -1)
        h = jnp.maximum(h @ w.T + b, 0.0)
    return h


if __name__ == "__main__":
    key = jax.random.PRNGKey(0)
    dec_sizes = [32, 64, 16]     # dec_sizes for MyDecoder
    n_classes = 10               # self.last = nn.Linear(16, 10); unused in forward
    B = 8

    key, kx = jax.random.split(key)
    x = jax.random.normal(kx, (B, 2, 4, 4), jnp.float32)     # flattens to (B, 32)

    params = init_decoder_params(key, dec_sizes)             # PyTorch-layout params
    prepared, in_widths = prepare_params(params)             # one-time pack + pad

    forward = build_decoder_forward(in_widths, dec_sizes[-1])
    out = jax.block_until_ready(forward(x, prepared))

    ref = _reference_forward(x, params)
    assert out.shape == (B, dec_sizes[-1]), out.shape
    assert jnp.allclose(out, ref, atol=1e-5, rtol=1e-5), "mismatch vs reference"

    print("KERNEL_OK")
</pallas_src>

<mosaic_0001>
module attributes {stable_mosaic.version = 11 : i64} {
  func.func @kernel(%arg0: memref<8x32xf32, #tpu.memory_space<vmem>>, %arg1: memref<33x128xf32, #tpu.memory_space<vmem>>, %arg2: memref<129x128xf32, #tpu.memory_space<vmem>>, %arg3: memref<8x16xf32, #tpu.memory_space<vmem>>) attributes {dimension_semantics = [], scalar_prefetch = 0 : i64, scratch_operands = 0 : i64, tpu.core_type = #tpu.core_type<tc>} {
    %c0 = arith.constant 0 : index
    %c0_0 = arith.constant 0 : index
    %0 = vector.load %arg0[%c0, %c0_0] : memref<8x32xf32, #tpu.memory_space<vmem>>, vector<8x32xf32>
    %c0_1 = arith.constant 0 : index
    %c0_2 = arith.constant 0 : index
    %1 = vector.load %arg1[%c0_1, %c0_2] : memref<33x128xf32, #tpu.memory_space<vmem>>, vector<33x128xf32>
    %2 = vector.extract_strided_slice %1 {offsets = [0, 0], sizes = [32, 128], strides = [1, 1]} : vector<33x128xf32> to vector<32x128xf32>
    %3 = vector.extract_strided_slice %1 {offsets = [32, 0], sizes = [1, 128], strides = [1, 1]} : vector<33x128xf32> to vector<1x128xf32>
    %cst = arith.constant dense<0.000000e+00> : vector<8x128xf32>
    %4 = tpu.matmul %0, %2, %cst {dimension_numbers = #tpu.dot_dimension_numbers<[1], [0], [0], [1], [0, 0, 1, 1], [], []>} : vector<8x32xf32>, vector<32x128xf32>, vector<8x128xf32> -> vector<8x128xf32>
    %5 = vector.broadcast %3 : vector<1x128xf32> to vector<8x128xf32>
    %6 = arith.addf %4, %5 : vector<8x128xf32>
    %cst_3 = arith.constant 0.000000e+00 : f32
    %7 = vector.broadcast %cst_3 : f32 to vector<8x128xf32>
    %8 = arith.maximumf %6, %7 : vector<8x128xf32>
    %c0_4 = arith.constant 0 : index
    %c0_5 = arith.constant 0 : index
    %9 = vector.load %arg2[%c0_4, %c0_5] : memref<129x128xf32, #tpu.memory_space<vmem>>, vector<129x128xf32>
    %10 = vector.extract_strided_slice %9 {offsets = [0, 0], sizes = [128, 128], strides = [1, 1]} : vector<129x128xf32> to vector<128x128xf32>
    %11 = vector.extract_strided_slice %9 {offsets = [128, 0], sizes = [1, 128], strides = [1, 1]} : vector<129x128xf32> to vector<1x128xf32>
    %cst_6 = arith.constant dense<0.000000e+00> : vector<8x128xf32>
    %12 = tpu.matmul %8, %10, %cst_6 {dimension_numbers = #tpu.dot_dimension_numbers<[1], [0], [0], [1], [0, 0, 1, 1], [], []>} : vector<8x128xf32>, vector<128x128xf32>, vector<8x128xf32> -> vector<8x128xf32>
    %13 = vector.broadcast %11 : vector<1x128xf32> to vector<8x128xf32>
    %14 = arith.addf %12, %13 : vector<8x128xf32>
    %cst_7 = arith.constant 0.000000e+00 : f32
    %15 = vector.broadcast %cst_7 : f32 to vector<8x128xf32>
    %16 = arith.maximumf %14, %15 : vector<8x128xf32>
    %17 = vector.extract_strided_slice %16 {offsets = [0, 0], sizes = [8, 16], strides = [1, 1]} : vector<8x128xf32> to vector<8x16xf32>
    %c0_8 = arith.constant 0 : index
    %c0_9 = arith.constant 0 : index
    %18 = vector.load %arg3[%c0_8, %c0_9] : memref<8x16xf32, #tpu.memory_space<vmem>>, vector<8x16xf32>
    tpu.vector_store %arg3[%c0_8, %c0_9], %17 {strides = array<i32>} : memref<8x16xf32, #tpu.memory_space<vmem>>, vector<8x16xf32>,
    return
  }
}

</mosaic_0001>

<bundles_post_ra>
// kernel: forward.1
= control target key start
LH: loop header
LB: loop body
LE: loop exit
PB: predicated region body
PF: predicated region fallthrough
CT: control target
= control target key end

     0   :  { %8 = vsyncpa [#allocation3], 0  ;;  %s448_s0 = inlined_call_operand.vmem [shape: f32[8,32], index: 0, kind: input, shape index: {}]   ;;  %s449_s1 = inlined_call_operand.vmem [shape: f32[33,128], index: 1, kind: input, shape index: {}]   ;;  %s450_s2 = inlined_call_operand.hbm [shape: f32[129,128], index: 2, kind: input, shape index: {}]   ;;  %s451_s3 = inlined_call_operand.hbm [shape: f32[8,16], index: 3, kind: output, shape index: {}]  }
   0x1   :  { %9 = vsyncpa [#allocation4], 0  ;;  %s379_s12 = smov [#allocation2]   ;;  %s331_s16 = scalar_lea.hbm %s450_s2, 2176 }
   0x2   :  { %s19_s13 = sshll.u32 %s379_s12, 4  ;;  %p332_p0 = scmp.ne.s32.totalorder %s450_s2, %s331_s16  ;;  %s20_s13 = int_to_ptr.vmem [resolvable:$true] %s19_s13 }
   0x3   :  { %p335_p1 = scmp.lt.u32.totalorder %s331_s16, %s450_s2 }
   0x5   :  { %p337_p2 = pnand %p335_p1, %p332_p0 }
   0x7   :  { %340 = shalt.err (!%p337_p2)
}
   0x8   :  { %s341_s21 = scalar_lea.vmem %s20_s13, 2176  ;;  %p346_p4 = scmp.lt.s32.totalorder %s20_s13, %s20_s13 }
   0x9   :  { %p342_p3 = scmp.ne.s32.totalorder %s20_s13, %s341_s21  ;;  %p347_p5 = scmp.lt.s32.totalorder %s341_s21, %s341_s21 }
   0xb   :  { %p348_p6 = por %p347_p5, %p346_p4 }
   0xd   :  { %p349_p7 = pnand %p348_p6, %p342_p3 }
   0xf   :  { %352 = shalt.err (!%p349_p7)
}
  0x10   :  { %s380_s22 = smov 128   ;;  %s381_s23 = smov 8  }
  0x11   :  { %25 = dma.hbm_to_vmem [thread:$0]  %s450_s2, 2176, %s20_s13, [#allocation3], %s380_s22, %s380_s22, %s381_s23  }
  0x12   :  { %375 = dma.done.wait [#allocation3], 2176  }
  0x13   :  { %376 = vsyncadd [#allocation3], 4294965120  ;;  %v382_v0 = vmov 0.0|0.0   ;;  %vm383_vm0 = vmmov 0   ;;  %v384_v1 = vmov 0.0   ;;  %v30_v2 = vld [vmem:[%s449_s1] sm:$0xff] }
  0x14   :  { %294 = vmatprep.subr.bf16.mxu0 %v382_v0  ;;  %256 = vmatprep.mubr.msk.f32.mxu0 %vm383_vm0, %v384_v1  ;;  %v31_v3 = vld [vmem:[%s449_s1 + $0x8] sm:$0xff]  ;;  %v32_v4 = vld [vmem:[%s449_s1 + $0x10] sm:$0xff]  ;;  %v33_v6 = vld [vmem:[%s449_s1 + $0x18] sm:$0xff]  ;;  %vm39_vm1 = vcmask 261120   ;;  %s385_s9 = smov [#allocation5]   ;;  %vm206_vm2 = vcmask 130048  }
  0x15   :  { %300 = vmatprep.subr.bf16.mxu1 %v382_v0  ;;  %291 = vmatprep.mubr.msk.f32.mxu1 %vm383_vm0, %v384_v1  ;;  %v295_v5 = vpack.c.bf16 %v31_v3, %v30_v2  ;;  %v114_v7 = vld [vmem:[#allocation2] sm:$0xff]  ;;  %v115_v8 = vld [vmem:[#allocation2 + $0x8] sm:$0xff]  ;;  %v116_v9 = vld [vmem:[#allocation2 + $0x10] sm:$0xff]  ;;  %v298_v11 = vpack.c.bf16 %v33_v6, %v32_v4  ;;  %s214_s10 = sshll.u32 %s385_s9, 4  ;;  %s215_s10 = int_to_ptr.vmem [resolvable:$true] %s214_s10 }
  0x16   :  { %v117_v10 = vld [vmem:[#allocation2 + $0x18] sm:$0xff]  ;;  %v301_v12 = vpack.c.bf16 %v115_v8, %v114_v7  ;;  %v118_v14 = vld [vmem:[#allocation2 + $0x20] sm:$0xff]  ;;  %v119_v15 = vld [vmem:[#allocation2 + $0x28] sm:$0xff]  ;;  %s353_s11 = scalar_lea.vmem %s215_s10, 128  ;;  %p358_p9 = scmp.lt.s32.totalorder %s215_s10, %s215_s10 }
  0x17   :  { %296 = vmatpush3.bf16.msra.mxu0 %v295_v5  ;;  %v304_v13 = vpack.c.bf16 %v117_v10, %v116_v9  ;;  %v29_v16 = vld [vmem:[%s448_s0] sm:$0xff]  ;;  %v307_v17 = vpack.c.bf16 %v119_v15, %v118_v14  ;;  %v120_v18 = vld [vmem:[#allocation2 + $0x30] sm:$0xff]  ;;  %v121_v19 = vld [vmem:[#allocation2 + $0x38] sm:$0xff]  ;;  %p354_p8 = scmp.ne.s32.totalorder %s215_s10, %s353_s11  ;;  %p359_p10 = scmp.lt.s32.totalorder %s353_s11, %s353_s11 }
  0x18   :  { %297 = vmatprep.subr.bf16.mxu0 %v382_v0  ;;  %302 = vmatpush3.bf16.msra.mxu1 %v301_v12  ;;  %v310_v20 = vpack.c.bf16 %v121_v19, %v120_v18  ;;  %v122_v21 = vld [vmem:[#allocation2 + $0x40] sm:$0xff]  ;;  %v123_v22 = vld [vmem:[#allocation2 + $0x48] sm:$0xff]  ;;  %v124_v24 = vld [vmem:[#allocation2 + $0x50] sm:$0xff] }
  0x19   :  { %303 = vmatprep.subr.bf16.mxu1 %v382_v0  ;;  %v313_v23 = vpack.c.bf16 %v123_v22, %v122_v21  ;;  %v125_v25 = vld [vmem:[#allocation2 + $0x58] sm:$0xff]  ;;  %v126_v27 = vld [vmem:[#allocation2 + $0x60] sm:$0xff]  ;;  %v127_v28 = vld [vmem:[#allocation2 + $0x68] sm:$0xff]  ;;  %p360_p11 = por %p359_p10, %p358_p9 }
  0x1a   :  { %v316_v26 = vpack.c.bf16 %v125_v25, %v124_v24  ;;  %v319_v29 = vpack.c.bf16 %v127_v28, %v126_v27  ;;  %v128_v30 = vld [vmem:[#allocation2 + $0x70] sm:$0xff]  ;;  %v129_v31 = vld [vmem:[#allocation2 + $0x78] sm:$0xff]  ;;  %v223_v33 = vld [vmem:[%s449_s1 + $0x20] ss:$0 sm:$0xff] }
  0x1b   :  { %299 = vmatpush3.bf16.msra.mxu0 %v298_v11  ;;  %v322_v32 = vpack.c.bf16 %v129_v31, %v128_v30  ;;  %v225_v38 = vld [vmem:[#allocation2 + $0x80] ss:$0 sm:$0xff]  ;;  %p361_p12 = pnand %p360_p11, %p354_p8 }
  0x1c   :  { %305 = vmatpush3.bf16.msra.mxu1 %v304_v13 }
  0x1d   :  { %306 = vmatprep.subr.bf16.mxu1 %v382_v0 }
  0x1e   :  { %257 = vmatmul.mubr.msk.f32.vlgmr.msra.gmra.mrb[0].mxu0 %vm39_vm1, %v29_v16 }
  0x20   :  { %308 = vmatpush3.bf16.msra.mxu1 %v307_v17 }
  0x21   :  { %309 = vmatprep.subr.bf16.mxu1 %v382_v0 }
  0x24   :  { %311 = vmatpush3.bf16.msra.mxu1 %v310_v20 }
  0x25   :  { %312 = vmatprep.subr.bf16.mxu1 %v382_v0 }
  0x28   :  { %314 = vmatpush3.bf16.msra.mxu1 %v313_v23 }
  0x29   :  { %315 = vmatprep.subr.bf16.mxu1 %v382_v0 }
  0x2c   :  { %317 = vmatpush3.bf16.msra.mxu1 %v316_v26 }
  0x2d   :  { %318 = vmatprep.subr.bf16.mxu1 %v382_v0 }
  0x30   :  { %320 = vmatpush3.bf16.msra.mxu1 %v319_v29 }
  0x31   :  { %321 = vmatprep.subr.bf16.mxu1 %v382_v0 }
  0x34   :  { %323 = vmatpush3.bf16.msra.mxu1 %v322_v32 }
  0xf1   :  { %v109_v34 = vpop.f32.mrb[0].mxu0 }
  0xf2   :  { %v110_v35 = vadd.f32 %v223_v33, %v109_v34  ;;  %v258_v36 = vpop.f32.mrb[1].mxu0 }
  0xf4   :  { %v113_v37 = vmax.f32 %v110_v35, 0.0 }
  0xf6   :  { %292 = vmatmul.mubr.f32.vlgmr.msra.gmra.mrb[0].mxu1 %v113_v37 }
 0x1c9   :  { %v201_v39 = vpop.f32.mrb[0].mxu1 }
 0x1ca   :  { %v202_v40 = vadd.f32 %v225_v38, %v201_v39  ;;  %v293_v41 = vpop.f32.mrb[1].mxu1 }
 0x1cc   :  { %v205_v42 = vmax.f32 %v202_v40, 0.0 }
 0x1ce   :  { %207 = vst.msk [vmem:[#allocation5] sm:$0xff] %vm206_vm2, %v205_v42 }
 0x1cf   :  { %364 = shalt.err (!%p361_p12)
}
 0x1d0   :  { %s365_s13 = scalar_lea.hbm %s451_s3, 128 }
 0x1d1   :  { %p366_p13 = scmp.ne.s32.totalorder %s451_s3, %s365_s13  ;;  %p369_p0 = scmp.lt.u32.totalorder %s365_s13, %s451_s3 }
 0x1d3   :  { %p371_p1 = pnand %p369_p0, %p366_p13 }
 0x1d5   :  { %374 = shalt.err (!%p371_p1)
}
 0x1d6   :  { %217 = dma.vmem_to_hbm [thread:$0]  %s215_s10, 128, %s451_s3, [#allocation4]  }
 0x1d7   :  { %377 = dma.done.wait [#allocation4], 128  }
 0x1d8   :  { %378 = vsyncadd [#allocation4], 4294967168 }
 0x1d9   :  { %221 = vsyncpa [#allocation3], 1 }
 0x1da   :  { %222 = vsyncpa [#allocation4], 1 }

</bundles_post_ra>
